<compile_context>
chip_gen: v7x
topology: tpu7x:2x2x1
jax: 0.10.0
libtpu: 0.0.40
codegen_flags: <defaults>
</compile_context>

<pallas_src>
from functools import partial

import jax
import jax.numpy as jnp
from jax.experimental import pallas as pl
from jax.experimental.pallas import tpu as pltpu


def _patch_embed_kernel(x_ref, w_ref, pos_ref, o_ref):
    """o = x @ W + (pos + bias)   (conv-as-matmul fused with the embedding add)."""
    acc = jnp.dot(x_ref[...], w_ref[...], preferred_element_type=jnp.float32)
    o_ref[...] = (acc + pos_ref[...].astype(jnp.float32)).astype(o_ref.dtype)


def _round_up(v, m):
    return ((v + m - 1) // m) * m


def _pick_row_tile(n_patches, batch):
    """Fixed <=256 row tile; ragged last block handled by pl.cdiv grid."""
    tm = min(256, n_patches)
    # v7x has two TensorCores: make sure some parallel grid axis has >= 2 steps.
    # If batch == 1, split the patch-row axis instead.
    if batch == 1 and n_patches > 8:
        tm = min(tm, _round_up(pl.cdiv(n_patches, 2), 8))
    if tm < n_patches:               # keep sublane (8) alignment when not full-dim
        tm = max(8, (tm // 8) * 8)
    return tm


@partial(jax.jit, static_argnames=("patch_size",))
def patch_embedding(x, conv_w, conv_b, cls_token, pos_emb, *, patch_size):
    """PatchEmbedding.forward (inference).

    x:         (B, C, H, W)
    conv_w:    (E, C, P, P)   conv_b: (E,)
    cls_token: (1, 1, E)      pos_emb: (1, N + 1, E)   with N = (H/P)*(W/P)
    returns:   (B, N + 1, E), dtype of x.
    """
    B, C, H, W = x.shape
    E = conv_w.shape[0]
    P = patch_size
    nh, nw = H // P, W // P
    N = nh * nw
    K = C * P * P
    Ccls = cls_token.shape[1]
    # The module's own `cat + pos_emb` add is only shape-consistent for a single
    # cls row (in_channels == 1 in the PyTorch parameterisation).
    assert Ccls == 1 and pos_emb.shape[1] == Ccls + N, "cls/pos shapes inconsistent"

    # --- im2col: stride==kernel conv is a per-patch matmul --------------------
    # Left to XLA, but marked fusable into the Pallas input DMA (allow_input_fusion)
    # so it does not have to be a separate HBM->HBM pass.
    patches = (
        x.reshape(B, C, nh, P, nw, P)
        .transpose(0, 2, 4, 1, 3, 5)          # (B, nh, nw, C, P, P)
        .reshape(B, N, K)
    )

    # --- fold conv bias into the patch rows of the positional embedding -------
    pos_pb = (pos_emb[0, Ccls:, :].astype(jnp.float32)
              + conv_b[None, :].astype(jnp.float32)).astype(x.dtype)      # (N, E)
    w2d = conv_w.reshape(E, K).T.astype(x.dtype)                          # (K, E)

    # --- lane/sublane padding --------------------------------------------------
    Ep = _round_up(E, 128) if E % 128 else E
    Kp = _round_up(K, 128) if (K > 128 and K % 128) else K
    if Kp != K:
        patches = jnp.pad(patches, ((0, 0), (0, 0), (0, Kp - K)))
        w2d = jnp.pad(w2d, ((0, Kp - K), (0, 0)))
    if Ep != E:
        w2d = jnp.pad(w2d, ((0, 0), (0, Ep - E)))
        pos_pb = jnp.pad(pos_pb, ((0, 0), (0, Ep - E)))

    TM = _pick_row_tile(N, B)
    grid = (pl.cdiv(N, TM), B)          # batch innermost: pos block re-DMA skipped

    # --- VMEM budget: double-buffered act/out/pos tiles + resident weight ------
    isz = x.dtype.itemsize
    vmem_bytes = 2 * (TM * Kp + 2 * TM * Ep) * isz + 2 * Kp * Ep * isz
    vmem_limit = int(min(max(vmem_bytes * 2, 16 * 1024 * 1024), 64 * 1024 * 1024))

    flops = 2 * B * N * Kp * Ep
    bytes_accessed = (B * N * Kp + Kp * Ep + N * Ep + B * N * Ep) * isz

    patch_out = pl.pallas_call(
        _patch_embed_kernel,
        out_shape=jax.ShapeDtypeStruct((B, N, Ep), x.dtype),
        grid_spec=pltpu.PrefetchScalarGridSpec(
            num_scalar_prefetch=0,
            grid=grid,
            in_specs=[
                # activation tile streams; batch dim squeezed out of the kernel ref
                pl.BlockSpec((None, TM, Kp), lambda i, b: (b, i, 0)),
                # weight resident for the whole grid
                pl.BlockSpec((Kp, Ep), lambda i, b: (0, 0)),
                # pos(+bias) rows: block index constant across inner batch steps
                pl.BlockSpec((TM, Ep), lambda i, b: (i, 0)),
            ],
            out_specs=pl.BlockSpec((None, TM, Ep), lambda i, b: (b, i, 0)),
        ),
        compiler_params=pltpu.CompilerParams(
            dimension_semantics=("parallel", "parallel"),
            allow_input_fusion=[True, False, False],
            vmem_limit_bytes=vmem_limit,
        ),
        cost_estimate=pl.CostEstimate(
            flops=flops, transcendentals=0, bytes_accessed=bytes_accessed),
    )(patches, w2d, pos_pb)

    if Ep != E:
        patch_out = patch_out[:, :, :E]

    # --- cls-token row: tiny (B, 1, E) broadcast add, then concatenate ---------
    cls = (jnp.broadcast_to(cls_token, (B, Ccls, E)).astype(jnp.float32)
           + pos_emb[:, :Ccls, :].astype(jnp.float32)).astype(x.dtype)
    return jnp.concatenate([cls, patch_out], axis=1)


if __name__ == "__main__":
    # Small ViT-ish shapes consistent with the module: batch=2, in_channels=1,
    # 16x16 image, 4x4 patches, embed_dim=32 -> num_patches=16, seq_len=17.
    B, C, H, W = 2, 1, 16, 16
    P = 4
    E = 32
    N = (H // P) * (W // P)

    key = jax.random.PRNGKey(0)
    kx, kw, kb, kc, kp = jax.random.split(key, 5)
    x = jax.random.normal(kx, (B, C, H, W), dtype=jnp.float32)
    conv_w = jax.random.normal(kw, (E, C, P, P), dtype=jnp.float32) * 0.05
    conv_b = jax.random.normal(kb, (E,), dtype=jnp.float32) * 0.01
    cls_token = jax.random.normal(kc, (1, C, E), dtype=jnp.float32)
    pos_emb = jax.random.normal(kp, (1, N + 1, E), dtype=jnp.float32)

    out = patch_embedding(x, conv_w, conv_b, cls_token, pos_emb, patch_size=P)
    jax.block_until_ready(out)

    # Reference: real strided conv + flatten + permute + cat + pos add (plain JAX).
    conv = jax.lax.conv_general_dilated(
        x, conv_w, window_strides=(P, P), padding="VALID",
        dimension_numbers=("NCHW", "OIHW", "NCHW"))              # (B, E, nh, nw)
    conv = conv + conv_b.reshape(1, E, 1, 1)
    patches_ref = conv.reshape(B, E, N).transpose(0, 2, 1)        # (B, N, E)
    cls_ref = jnp.broadcast_to(cls_token, (B, C, E))
    ref = jnp.concatenate([cls_ref, patches_ref], axis=1) + pos_emb

    assert out.shape == (B, N + 1, E)
    assert jnp.allclose(out, ref, atol=1e-4, rtol=1e-4), "mismatch vs reference"
    print("KERNEL_OK")
</pallas_src>

<mosaic_0001>
module attributes {stable_mosaic.version = 11 : i64} {
  func.func @_patch_embed_kernel(%arg0: i32, %arg1: i32, %arg2: memref<1x16x16xf32, #tpu.memory_space<vmem>>, %arg3: memref<16x128xf32, #tpu.memory_space<vmem>>, %arg4: memref<16x128xf32, #tpu.memory_space<vmem>>, %arg5: memref<1x16x128xf32, #tpu.memory_space<vmem>>) attributes {dimension_semantics = [#tpu.dimension_semantics<parallel>, #tpu.dimension_semantics<parallel>], iteration_bounds = array<i64: 1, 2>, scalar_prefetch = 0 : i64, scratch_operands = 0 : i64, tpu.core_type = #tpu.core_type<tc>, window_params = [{transform_indices = @transform_0, window_bounds = array<i64: 1, 16, 16>}, {pipeline_mode = #tpu.pipeline_mode<synchronous>, transform_indices = @transform_1, window_bounds = array<i64: 16, 128>}, {transform_indices = @transform_2, window_bounds = array<i64: 16, 128>}, {transform_indices = @transform_3, window_bounds = array<i64: 1, 16, 128>}]} {
    %c0 = arith.constant 0 : index
    %c0_0 = arith.constant 0 : index
    %c0_1 = arith.constant 0 : index
    %0 = vector.load %arg2[%c0, %c0_0, %c0_1] : memref<1x16x16xf32, #tpu.memory_space<vmem>>, vector<1x16x16xf32>
    %1 = vector.shape_cast %0 : vector<1x16x16xf32> to vector<16x16xf32>
    %c0_2 = arith.constant 0 : index
    %c0_3 = arith.constant 0 : index
    %2 = vector.load %arg3[%c0_2, %c0_3] : memref<16x128xf32, #tpu.memory_space<vmem>>, vector<16x128xf32>
    %cst = arith.constant dense<0.000000e+00> : vector<16x128xf32>
    %3 = tpu.matmul %1, %2, %cst {dimension_numbers = #tpu.dot_dimension_numbers<[1], [0], [0], [1], [0, 0, 1, 1], [], []>} : vector<16x16xf32>, vector<16x128xf32>, vector<16x128xf32> -> vector<16x128xf32>
    %c0_4 = arith.constant 0 : index
    %c0_5 = arith.constant 0 : index
    %4 = vector.load %arg4[%c0_4, %c0_5] : memref<16x128xf32, #tpu.memory_space<vmem>>, vector<16x128xf32>
    %5 = arith.addf %3, %4 : vector<16x128xf32>
    %c0_6 = arith.constant 0 : index
    %c0_7 = arith.constant 0 : index
    %c0_8 = arith.constant 0 : index
    %6 = vector.load %arg5[%c0_6, %c0_7, %c0_8] : memref<1x16x128xf32, #tpu.memory_space<vmem>>, vector<1x16x128xf32>
    %7 = vector.shape_cast %6 : vector<1x16x128xf32> to vector<16x128xf32>
    %8 = vector.shape_cast %5 : vector<16x128xf32> to vector<1x16x128xf32>
    tpu.vector_store %arg5[%c0_6, %c0_7, %c0_8], %8 {strides = array<i32>} : memref<1x16x128xf32, #tpu.memory_space<vmem>>, vector<1x16x128xf32>,
    return
  }
  func.func @transform_0(%arg0: i32, %arg1: i32) -> (i32, i32, i32) {
    %c0_i32 = arith.constant 0 : i32
    %c0_i32_0 = arith.constant 0 : i32
    return %arg1, %arg0, %c0_i32 : i32, i32, i32
  }
  func.func @transform_1(%arg0: i32, %arg1: i32) -> (i32, i32) {
    %c0_i32 = arith.constant 0 : i32
    %c0_i32_0 = arith.constant 0 : i32
    %c0_i32_1 = arith.constant 0 : i32
    return %c0_i32, %c0_i32_0 : i32, i32
  }
  func.func @transform_2(%arg0: i32, %arg1: i32) -> (i32, i32) {
    %c0_i32 = arith.constant 0 : i32
    %c0_i32_0 = arith.constant 0 : i32
    return %arg0, %c0_i32 : i32, i32
  }
  func.func @transform_3(%arg0: i32, %arg1: i32) -> (i32, i32, i32) {
    %c0_i32 = arith.constant 0 : i32
    %c0_i32_0 = arith.constant 0 : i32
    return %arg1, %arg0, %c0_i32 : i32, i32, i32
  }
}

</mosaic_0001>

<bundles_post_ra>
// kernel: patch_embedding.1
= control target key start
LH: loop header
LB: loop body
LE: loop exit
PB: predicated region body
PF: predicated region fallthrough
CT: control target
= control target key end

     0   :  { %s523_s12 = smov 0   ;;  %s525_s13 = smov 0   ;;  %s568_s0 = inlined_call_operand.vmem [shape: f32[2,16,16], index: 0, kind: input, shape index: {}]   ;;  %s569_s1 = inlined_call_operand.vmem [shape: f32[16,128], index: 1, kind: input, shape index: {}]   ;;  %s570_s2 = inlined_call_operand.vmem [shape: f32[16,128], index: 2, kind: input, shape index: {}]   ;;  %s571_s3 = inlined_call_operand.vmem [shape: f32[2,16,128], index: 3, kind: output, shape index: {}]  }
   0x1   :  { %s527_s14 = smov 0  }
   0x2 LB: > { %s22_s15 = sadd.s32 1, %s497_s13  ;;  %p429_p0 = scmp.ge.s32.totalorder %s501_s14, 1  ;;  %s501_s14 = sphi %s527_s14, %s13_s14   ;;  %s497_s13 = sphi %s525_s13, %s573_s13   ;;  %s493_s12 = sphi %s523_s12, %s572_s12  }
   0x3   : > { %p23_p1 = scmp.ge.s32.totalorder %s22_s15, 2  ;;  %p169_p2 = scmp.lt.s32.totalorder %s501_s14, 3 }
   0x5   : > { %s575_s15 = smov (%p23_p1, %s22_s15), 0  ;;  %p170_p3 = pnand %p429_p0, %p169_p2 }
   0x6   : > { %v234_v0 = vld [vmem:[%s569_s1] sm:$0xff] (!%p170_p3)  ;;  %v235_v1 = vld [vmem:[%s569_s1 + $0x8] sm:$0xff] (!%p170_p3)  ;;  %p207_p4 = scmp.lt.s32.totalorder (!%p170_p3), %s493_s12, 1  ;;  %vm238_vm0 = vcmask (!%p170_p3), 130048  }
   0x7   : > { %173 = sbr.rel (%p170_p3) target bundleno = 235 (0xeb), region = 32  ;;  %v451_v2 = vpack.c.bf16 (!%p170_p3), %v235_v1, %v234_v0  ;;  %v237_v5 = vld [vmem:[%s570_s2 + $0x8] sm:$0xff] (!%p170_p3)  ;;  %v236_v6 = vld [vmem:[%s570_s2] sm:$0xff] (!%p170_p3) }
   0x9   : > { %452 = vmatprep.subr.bf16.mxu0 (!%p170_p3), %v451_v2 }
   0xa   : > { %454 = vmatpush3.bf16.msra.mxu0 (!%p170_p3), %v451_v2 }
   0xe   : > { %s577_s12 = smov (!%p207_p4, %s493_s12), 1 }
   0xf   : > { %s438_s20 = sshll.u32 %s577_s12, 4 }
  0x10   : > { %s214_s23 = scalar_lea.vmem %s568_s0, %s438_s20  ;;  %s230_s30 = scalar_lea.vmem %s571_s3, %s438_s20 }
  0x11   : > { %v232_v3 = vld [vmem:[%s214_s23] sm:$0xff]  ;;  %v233_v4 = vld [vmem:[%s214_s23 + $0x8] sm:$0xff] }
  0x12   : > { %448 = vmatprep.mubr.msk.f32.mxu0 %vm238_vm0, %v232_v3 }
  0x13   : > { %449 = vmatmul.mubr.msk.f32.vlgmr.msra.gmra.mrb[0].mxu0 %vm238_vm0, %v233_v4 }
  0xe6   : > { %v450_v7 = vpop.f32.mrb[0].mxu0 }
  0xe7   : > { %v317_v8 = vadd.f32 %v450_v7, %v237_v5  ;;  %v311_v9 = vpop.f32.mrb[1].mxu0 }
  0xe8   : > { %v312_v10 = vadd.f32 %v311_v9, %v236_v6 }
  0xe9   : > { %321 = vst [vmem:[%s230_s30 + $0x8] sm:$0xff] %v317_v8 }
  0xea   : > { %320 = vst [vmem:[%s230_s30] sm:$0xff] %v312_v10 }
  0xeb PF: > { %s13_s14 = sadd.s32 1, %s501_s14   ;;  %s572_s12 = smov %s497_s13 }
  0xec   : > { %p10_p5 = scmp.ge.s32.totalorder %s13_s14, 4   ;;  %s573_s13 = smov %s575_s15 }
  0xee   :  { %12 = sbr.rel (!%p10_p5) target bundleno = 2 (0x2), region = 65 }

</bundles_post_ra>
